<compile_context>
chip_gen: v5e
topology: v5e:2x2
jax: 0.10.0
libtpu: 0.0.40
codegen_flags: <defaults>
</compile_context>

<pallas_src>
import numpy as np
import jax
import jax.numpy as jnp
from jax import lax
from jax.experimental import pallas as pl
from jax.experimental.pallas import tpu as pltpu


# --------------------------------------------------------------------------- kernels
def _freqs_kernel(pos_ref, invf_ref, bias_ref, cos_ref, sin_ref):
    """Rotary.forward: angle = positions ⊗ inv_freq + bias, emitted lane-dense:
         cos_full[:, 2k] = cos_full[:, 2k+1] = cos(angle[:, k])
         sin_signed[:, 2k] = -sin(angle[:, k]);  sin_signed[:, 2k+1] = +sin(angle[:, k])
    inv_freq / bias arrive already interleave-duplicated, so every store is a full
    128-lane-wide vst (no masked 64-lane writes)."""
    ang = pos_ref[...] * invf_ref[...] + bias_ref[...]        # (tt,1)*(1,D)+(tt,D) -> (tt,D)
    lane = lax.broadcasted_iota(jnp.int32, ang.shape, 1)
    s = jnp.sin(ang)
    cos_ref[...] = jnp.cos(ang)
    sin_ref[...] = jnp.where((lane & 1) == 0, -s, s)


def _apply_rotary_kernel(x_ref, cos_ref, sin_ref, o_ref):
    """Rotary.apply_rotary on one (bn, tt, D) slab.

        out = x * cos_full + swap(x) * sin_signed

    swap(x) exchanges the two lanes of each (even, odd) pair, built from two XLU lane
    rotations + a VPU parity select (no dense pair-swap matmul, no MXU use).
    Trailing (non-rotated) features pass through because their cos=1 / sin=0."""
    cdt = cos_ref.dtype
    x = x_ref[...].astype(cdt)                                # (bn, tt, D)
    d = x.shape[-1]
    x_next = pltpu.roll(x, shift=d - 1, axis=2)               # lane j <- x[j+1]
    x_prev = pltpu.roll(x, shift=1, axis=2)                   # lane j <- x[j-1]
    lane = lax.broadcasted_iota(jnp.int32, x.shape, 2)
    x_swap = jnp.where((lane & 1) == 1, x_prev, x_next)       # even lanes: next, odd: prev
    out = x * cos_ref[...] + x_swap * sin_ref[...]
    o_ref[...] = out.astype(o_ref.dtype)


# --------------------------------------------------------------------------- tiling helpers
def _seq_tile(T):
    """Sequence tile: full T when small, else a multiple-of-8 divisor capped at 512.
    Never returns a huge full-T block for long, awkward T (v7x VMEM guard); the caller
    pads the sequence axis up to a multiple of the returned tile instead."""
    if T <= 512:
        return T
    for cand in (512, 256, 128, 64, 32, 16, 8):
        if T % cand == 0:
            return cand
    return 512


def _lead_tile(N):
    """Block size along the flattened batch*head axis (amortizes per-step overhead)."""
    for cand in (8, 4, 2, 1):
        if N % cand == 0:
            return cand
    return 1


# --------------------------------------------------------------------------- wrappers
def rotary_freqs(positions, inv_freq, bias):
    """Pallas version of Rotary.forward -> (cos_full, sin_signed), each (T, 2*(dims//2)), f32."""
    if isinstance(positions, int):
        pos = jnp.arange(positions, dtype=jnp.float32)
    else:
        pos = jnp.asarray(positions).astype(jnp.float32)
    T = pos.shape[0]
    d2 = inv_freq.shape[0]
    d_rot = 2 * d2

    # One-time (per forward call) interleave-duplication of the tiny parameter tensors;
    # everything downstream is full-lane-width.
    invf_full = jnp.repeat(inv_freq.astype(jnp.float32), 2).reshape(1, d_rot)
    bias_full = jnp.repeat(bias[:T].astype(jnp.float32), 2, axis=-1)
    pos2 = pos.reshape(T, 1)

    tt = _seq_tile(T)
    Tp = pl.cdiv(T, tt) * tt
    if Tp != T:
        pos2 = jnp.pad(pos2, ((0, Tp - T), (0, 0)))
        bias_full = jnp.pad(bias_full, ((0, Tp - T), (0, 0)))

    cos_full, sin_signed = pl.pallas_call(
        _freqs_kernel,
        out_shape=(jax.ShapeDtypeStruct((Tp, d_rot), jnp.float32),
                   jax.ShapeDtypeStruct((Tp, d_rot), jnp.float32)),
        grid=(Tp // tt,),
        in_specs=[pl.BlockSpec((tt, 1), lambda t: (t, 0)),
                  pl.BlockSpec((1, d_rot), lambda t: (0, 0)),
                  pl.BlockSpec((tt, d_rot), lambda t: (t, 0))],
        out_specs=(pl.BlockSpec((tt, d_rot), lambda t: (t, 0)),
                   pl.BlockSpec((tt, d_rot), lambda t: (t, 0))),
        compiler_params=pltpu.CompilerParams(dimension_semantics=("parallel",)),
    )(pos2, invf_full, bias_full)

    if Tp != T:
        cos_full, sin_signed = cos_full[:T], sin_signed[:T]
    return cos_full, sin_signed


def apply_rotary(x, cos_full, sin_signed, compute_dtype=None):
    """Pallas version of Rotary.apply_rotary(x, freqs), freqs given as lane-dense tables."""
    T, d_rot = cos_full.shape
    D = x.shape[-1]
    assert x.shape[-2] == T and d_rot <= D and D % 2 == 0 and d_rot % 2 == 0

    lead = x.shape[:-2]
    N = int(np.prod(lead)) if lead else 1
    x3 = x.reshape(N, T, D)

    # v6e/v7x: bf16 activations keep bf16 tables/math (bf16 VALU, halves table HBM
    # traffic).  f32 everywhere else (v5e has no bf16 VPU/EUP path).
    if compute_dtype is None:
        compute_dtype = jnp.bfloat16 if x.dtype == jnp.bfloat16 else jnp.float32
    cos_t = cos_full.astype(compute_dtype)
    sin_t = sin_signed.astype(compute_dtype)
    if d_rot < D:
        # Trailing passthrough features: cos=1 / sin=0 (single dense pad, no strided scatter).
        cos_t = jnp.concatenate([cos_t, jnp.ones((T, D - d_rot), compute_dtype)], axis=-1)
        sin_t = jnp.concatenate([sin_t, jnp.zeros((T, D - d_rot), compute_dtype)], axis=-1)

    tt = _seq_tile(T)
    bn = _lead_tile(N)
    Tp = pl.cdiv(T, tt) * tt
    if Tp != T:
        x3 = jnp.pad(x3, ((0, 0), (0, Tp - T), (0, 0)))
        cos_t = jnp.pad(cos_t, ((0, Tp - T), (0, 0)))
        sin_t = jnp.pad(sin_t, ((0, Tp - T), (0, 0)))

    out = pl.pallas_call(
        _apply_rotary_kernel,
        out_shape=jax.ShapeDtypeStruct((N, Tp, D), x.dtype),
        # Seq tiles outer, batch*head tiles inner: the table block index is constant
        # across the inner axis, so Pallas skips the cos/sin re-DMA and only x streams.
        grid=(Tp // tt, N // bn),
        in_specs=[pl.BlockSpec((bn, tt, D), lambda t, n: (n, t, 0)),
                  pl.BlockSpec((tt, D), lambda t, n: (t, 0)),
                  pl.BlockSpec((tt, D), lambda t, n: (t, 0))],
        out_specs=pl.BlockSpec((bn, tt, D), lambda t, n: (n, t, 0)),
        compiler_params=pltpu.CompilerParams(
            dimension_semantics=("parallel", "parallel")),
    )(x3, cos_t, sin_t)

    if Tp != T:
        out = out[:, :T]
    return out.reshape(x.shape)


# --------------------------------------------------------------------------- pure-JAX reference
def reference_freqs(positions, inv_freq, bias):
    if isinstance(positions, int):
        t = jnp.arange(positions, dtype=jnp.float32)
    else:
        t = jnp.asarray(positions).astype(jnp.float32)
    freqs = jnp.einsum('i,j->ij', t, inv_freq.astype(jnp.float32))
    freqs = freqs + bias[:freqs.shape[0]].astype(jnp.float32)
    return jnp.cos(freqs), jnp.sin(freqs)          # torch.polar(1, freqs) == cos + i*sin


def reference_apply(x, cos, sin):
    d2 = cos.shape[-1]
    x1 = x[..., :2 * d2].astype(jnp.float32)
    x2 = x[..., 2 * d2:]
    xr = x1.reshape(*x1.shape[:-1], d2, 2)
    a, b = xr[..., 0], xr[..., 1]
    ra = a * cos - b * sin
    rb = a * sin + b * cos
    out1 = jnp.stack([ra, rb], axis=-1).reshape(x1.shape).astype(x.dtype)
    return jnp.concatenate([out1, x2], axis=-1)


# --------------------------------------------------------------------------- main
if __name__ == "__main__":
    # small shapes: batch=2, heads=4, seq=8, rotary dims (head_dim) = 128, max_ctx=16
    B, H, T, D = 2, 4, 8, 128
    MAX_CTX = 16
    d2 = D // 2

    key = jax.random.PRNGKey(0)
    kb, kx = jax.random.split(key)

    inv_freq = 1.0 / (10000.0 ** (jnp.arange(0, D, 2, dtype=jnp.float32) / D))
    bias = 0.05 * jax.random.normal(kb, (MAX_CTX, d2), jnp.float32)   # learned bias param
    x = jax.random.normal(kx, (B, H, T, D), jnp.float32)

    # TODO(synk): training-mode parameter updates (learned_freq) are out of scope —
    #             this implements the forward pass only.
    cos_full, sin_signed = rotary_freqs(T, inv_freq, bias)   # Rotary.forward(T)
    out = apply_rotary(x, cos_full, sin_signed)              # Rotary.apply_rotary(x, freqs)
    out = jax.block_until_ready(out)

    ref_cos, ref_sin = reference_freqs(T, inv_freq, bias)
    ref_out = reference_apply(x, ref_cos, ref_sin)

    assert out.shape == x.shape and out.dtype == x.dtype
    err_f = float(jnp.max(jnp.abs(cos_full[:, 0::2] - ref_cos))
                  + jnp.max(jnp.abs(sin_signed[:, 1::2] - ref_sin)))
    err_o = float(jnp.max(jnp.abs(out - ref_out)))
    assert err_f < 1e-4, f"freqs mismatch: {err_f}"
    assert err_o < 1e-4, f"apply_rotary mismatch: {err_o}"

    print("KERNEL_OK")
</pallas_src>

<mosaic_0001>
module attributes {stable_mosaic.version = 11 : i64} {
  func.func @_freqs_kernel(%arg0: i32, %arg1: memref<8x1xf32, #tpu.memory_space<vmem>>, %arg2: memref<1x128xf32, #tpu.memory_space<vmem>>, %arg3: memref<8x128xf32, #tpu.memory_space<vmem>>, %arg4: memref<8x128xf32, #tpu.memory_space<vmem>>, %arg5: memref<8x128xf32, #tpu.memory_space<vmem>>) attributes {dimension_semantics = [#tpu.dimension_semantics<parallel>], iteration_bounds = array<i64: 1>, scalar_prefetch = 0 : i64, scratch_operands = 0 : i64, tpu.core_type = #tpu.core_type<tc>, window_params = [{transform_indices = @transform_0, window_bounds = array<i64: 8, 1>}, {pipeline_mode = #tpu.pipeline_mode<synchronous>, transform_indices = @transform_1, window_bounds = array<i64: 1, 128>}, {transform_indices = @transform_2, window_bounds = array<i64: 8, 128>}, {transform_indices = @transform_3, window_bounds = array<i64: 8, 128>}, {transform_indices = @transform_4, window_bounds = array<i64: 8, 128>}]} {
    %c0 = arith.constant 0 : index
    %c0_0 = arith.constant 0 : index
    %0 = vector.load %arg1[%c0, %c0_0] : memref<8x1xf32, #tpu.memory_space<vmem>>, vector<8x1xf32>
    %c0_1 = arith.constant 0 : index
    %c0_2 = arith.constant 0 : index
    %1 = vector.load %arg2[%c0_1, %c0_2] : memref<1x128xf32, #tpu.memory_space<vmem>>, vector<1x128xf32>
    %2 = vector.broadcast %0 : vector<8x1xf32> to vector<8x128xf32>
    %3 = vector.broadcast %1 : vector<1x128xf32> to vector<8x128xf32>
    %4 = arith.mulf %2, %3 : vector<8x128xf32>
    %c0_3 = arith.constant 0 : index
    %c0_4 = arith.constant 0 : index
    %5 = vector.load %arg3[%c0_3, %c0_4] : memref<8x128xf32, #tpu.memory_space<vmem>>, vector<8x128xf32>
    %6 = arith.addf %4, %5 : vector<8x128xf32>
    %7 = tpu.iota {dimensions = array<i32: 1>} : vector<8x128xi32>
    %8 = math.sin %6 : vector<8x128xf32>
    %9 = math.cos %6 : vector<8x128xf32>
    %c0_5 = arith.constant 0 : index
    %c0_6 = arith.constant 0 : index
    %10 = vector.load %arg4[%c0_5, %c0_6] : memref<8x128xf32, #tpu.memory_space<vmem>>, vector<8x128xf32>
    tpu.vector_store %arg4[%c0_5, %c0_6], %9 {strides = array<i32>} : memref<8x128xf32, #tpu.memory_space<vmem>>, vector<8x128xf32>,
    %c1_i32 = arith.constant 1 : i32
    %11 = vector.broadcast %c1_i32 : i32 to vector<8x128xi32>
    %12 = arith.andi %7, %11 : vector<8x128xi32>
    %c0_i32 = arith.constant 0 : i32
    %13 = vector.broadcast %c0_i32 : i32 to vector<8x128xi32>
    %14 = arith.cmpi eq, %12, %13 : vector<8x128xi32>
    %cst = arith.constant 0.000000e+00 : f32
    %15 = vector.broadcast %cst : f32 to vector<8x128xf32>
    %16 = arith.subf %15, %8 : vector<8x128xf32>
    %17 = arith.select %14, %16, %8 : vector<8x128xi1>, vector<8x128xf32>
    %c0_7 = arith.constant 0 : index
    %c0_8 = arith.constant 0 : index
    %18 = vector.load %arg5[%c0_7, %c0_8] : memref<8x128xf32, #tpu.memory_space<vmem>>, vector<8x128xf32>
    tpu.vector_store %arg5[%c0_7, %c0_8], %17 {strides = array<i32>} : memref<8x128xf32, #tpu.memory_space<vmem>>, vector<8x128xf32>,
    return
  }
  func.func @transform_0(%arg0: i32) -> (i32, i32) {
    %c0_i32 = arith.constant 0 : i32
    %c0_i32_0 = arith.constant 0 : i32
    return %arg0, %c0_i32 : i32, i32
  }
  func.func @transform_1(%arg0: i32) -> (i32, i32) {
    %c0_i32 = arith.constant 0 : i32
    %c0_i32_0 = arith.constant 0 : i32
    %c0_i32_1 = arith.constant 0 : i32
    return %c0_i32, %c0_i32_0 : i32, i32
  }
  func.func @transform_2(%arg0: i32) -> (i32, i32) {
    %c0_i32 = arith.constant 0 : i32
    %c0_i32_0 = arith.constant 0 : i32
    return %arg0, %c0_i32 : i32, i32
  }
  func.func @transform_3(%arg0: i32) -> (i32, i32) {
    %c0_i32 = arith.constant 0 : i32
    %c0_i32_0 = arith.constant 0 : i32
    return %arg0, %c0_i32 : i32, i32
  }
  func.func @transform_4(%arg0: i32) -> (i32, i32) {
    %c0_i32 = arith.constant 0 : i32
    %c0_i32_0 = arith.constant 0 : i32
    return %arg0, %c0_i32 : i32, i32
  }
}

</mosaic_0001>

<bundles_post_ra>
// kernel: tpu_custom_call.1
= control target key start
LH: loop header
LB: loop body
LE: loop exit
PB: predicated region body
PF: predicated region fallthrough
CT: control target
= control target key end

     0   :  { %10 = vsyncpa [#allocation3], 0  ;;  %v449_v1 = vmov 0   ;;  %s558_s0 = inlined_call_operand.vmem [shape: f32[8,1], index: 0, kind: input, shape index: {}]   ;;  %s559_s1 = inlined_call_operand.vmem [shape: f32[1,128], index: 1, kind: input, shape index: {}]   ;;  %s560_s2 = inlined_call_operand.vmem [shape: f32[8,128], index: 2, kind: input, shape index: {}]   ;;  %s561_s3 = inlined_call_operand.hbm [shape: f32[8,128], index: 3, kind: output, shape index: {0}]   ;;  %s562_s4 = inlined_call_operand.hbm [shape: f32[8,128], index: 4, kind: output, shape index: {1}]  }
   0x1   :  { %v18_v0 = vld [vmem:[%s558_s0] sm:$0xff]  ;;  %395 = vset.pattern.permute.xlu0 %v449_v1 }
   0x2   :  { %22 = vperm.xlu0 %395, %v18_v0  }
   0x3   :  { %11 = vsyncpa [#allocation5], 0  ;;  %v396_v2 = vld [vmem:[%s559_s1] ss:$0 sm:$0xff]  ;;  %v450_v18 = vmov 2102212464  }
   0x4   :  { %v29_v3 = vld [vmem:[%s560_s2] sm:$0xff]  ;;  %v451_v20 = vmov 920167782   ;;  %v452_v23 = vmov 1326507024   ;;  %s456_s0 = smov [#allocation2]  }
   0x5   :  { %v453_v25 = vmov 683565275   ;;  %v454_v27 = vmov 2475754826   ;;  %v455_v30 = vmov 2131351028  }
   0x6   :  { %s353_s1 = sshll.u32 %s456_s0, 4  ;;  %s355_s22 = sshll.u32 %s561_s3, 4  ;;  %s354_s1 = int_to_ptr.vmem [resolvable:$true] %s353_s1  ;;  %s356_s22 = int_to_ptr.hbm [resolvable:$true] %s355_s22 }
   0x7   :  { %s457_s23 = smov [#allocation4]   ;;  %s366_s27 = sshll.u32 %s562_s4, 4  ;;  %s367_s27 = int_to_ptr.hbm [resolvable:$true] %s366_s27 }
   0x8   :  { %s364_s24 = sshll.u32 %s457_s23, 4  ;;  %s365_s24 = int_to_ptr.vmem [resolvable:$true] %s364_s24 }
  0x74   :  { %v23_v4 = vpop.permute.xlu0 %22 }
  0x75   :  { %v28_v5 = vmul.f32 %v396_v2, %v23_v4 }
  0x77   :  { %v493_v6 = vadd.f32 %v29_v3, %v28_v5 }
  0x79   :  { %v36_v7 = vand.u32 2139095040, %v493_v6  ;;  %v33_v10 = vand.u32 2147483647, %v493_v6  ;;  %vm35_vm12 = vcmp.lt.s32.totalorder %v493_v6, 0 }
  0x7b   :  { %v37_v8 = vshrl.u32 %v36_v7, 23  ;;  %v40_v12 = vand.u32 8388607, %v33_v10  ;;  %vm34_vm13 = vcmp.le.f32.partialorder %v33_v10, 0.7853982 }
  0x7d   :  { %v380_v9 = vadd.s32 4294967169, %v37_v8  ;;  %v41_v16 = vor.u32 8388608, %v40_v12 }
  0x7f   :  { %v43_v11 = vadd.s32 1, %v380_v9  ;;  %v508_v37 = vshll.u32 %v41_v16, 8 }
  0x81   :  { %vm44_vm0 = vcmp.gt.s32.totalorder %v43_v11, 0  ;;  %v82_v47 = vand.u32 65535, %v508_v37  ;;  %v83_v49 = vshrl.u32 %v508_v37, 16 }
  0x82   :  { %v45_v13 = vsel %vm44_vm0, %v43_v11, 0 }
  0x83   :  { %v47_v14 = vand.u32 31, %v45_v13  ;;  %v501_v17 = vshrl.u32 %v45_v13, 5 }
  0x85   :  { %v499_v15 = vsub.s32 32, %v47_v14  ;;  %v59_v19 = vshll.u32 %v450_v18, %v47_v14  ;;  %v62_v21 = vshll.u32 %v451_v20, %v47_v14  ;;  %v50_v26 = vshll.u32 %v453_v25, %v47_v14 }
  0x86   :  { %v53_v29 = vshll.u32 %v454_v27, %v47_v14  ;;  %v56_v32 = vshll.u32 %v455_v30, %v47_v14  ;;  %vm68_vm1 = vcmp.lt.s32.totalorder %v501_v17, 4  ;;  %vm65_vm2 = vcmp.lt.s32.totalorder %v501_v17, 1 }
  0x87   :  { %v60_v22 = vshrl.u32 %v451_v20, %v499_v15  ;;  %v63_v24 = vshrl.u32 %v452_v23, %v499_v15  ;;  %v51_v28 = vshrl.u32 %v454_v27, %v499_v15  ;;  %v54_v31 = vshrl.u32 %v455_v30, %v499_v15 }
  0x88   :  { %v57_v33 = vshrl.u32 %v450_v18, %v499_v15  ;;  %vm67_vm3 = vcmp.lt.s32.totalorder %v501_v17, 3  ;;  %vm66_vm4 = vcmp.lt.s32.totalorder %v501_v17, 2  ;;  %v49_v11 = vshrl.u32 %v453_v25, %v499_v15 }
  0x89   :  { %v61_v34 = vor.u32 %v60_v22, %v59_v19  ;;  %v64_v35 = vor.u32 %v63_v24, %v62_v21  ;;  %v52_v36 = vor.u32 %v51_v28, %v50_v26  ;;  %v55_v38 = vor.u32 %v54_v31, %v53_v29 }
  0x8a   :  { %v58_v39 = vor.u32 %v57_v33, %v56_v32 }
  0x8b   :  { %v74_v40 = vsel %vm68_vm1, %v61_v34, 920167782  ;;  %v78_v41 = vsel %vm68_vm1, %v64_v35, 1326507024  ;;  %v73_v42 = vsel %vm65_vm2, %v52_v36, %v55_v38  ;;  %v69_v19 = vsel %vm65_vm2, %v49_v11, %v52_v36 }
  0x8c   :  { %v75_v43 = vsel %vm67_vm3, %v58_v39, %v74_v40  ;;  %v77_v44 = vsel %vm65_vm2, %v55_v38, %v58_v39  ;;  %v79_v46 = vsel %vm67_vm3, %v61_v34, %v78_v41  ;;  %v70_v7 = vsel %vm68_vm1, %v58_v39, 2102212464 }
  0x8d   :  { %v76_v45 = vsel %vm66_vm4, %v73_v42, %v75_v43  ;;  %v80_v48 = vsel %vm66_vm4, %v77_v44, %v79_v46  ;;  %v71_v20 = vsel %vm67_vm3, %v55_v38, %v70_v7 }
  0x8e   :  { %v106_v50 = vand.u32 65535, %v76_v45  ;;  %v107_v51 = vshrl.u32 %v76_v45, 16  ;;  %v84_v52 = vand.u32 65535, %v80_v48  ;;  %v85_v53 = vshrl.u32 %v80_v48, 16 }
  0x8f   :  { %v72_v25 = vsel %vm66_vm4, %v69_v19, %v71_v20  ;;  %vm176_vm4 = vweird.f32 %v493_v6 }
  0x90   :  { %v109_v54 = vmul.u32 %v107_v51, %v82_v47  ;;  %v110_v55 = vmul.u32 %v106_v50, %v83_v49  ;;  %v87_v56 = vmul.u32 %v85_v53, %v82_v47  ;;  %v88_v57 = vmul.u32 %v84_v52, %v83_v49 }
  0x91   :  { %v108_v58 = vmul.u32 %v106_v50, %v82_v47  ;;  %v86_v60 = vmul.u32 %v84_v52, %v82_v47  ;;  %v111_v62 = vmul.u32 %v107_v51, %v83_v49  ;;  %v89_v63 = vmul.u32 %v85_v53, %v83_v49 }
  0x92   :  { %v112_v59 = vshll.u32 %v109_v54, 16  ;;  %v90_v61 = vshll.u32 %v87_v56, 16  ;;  %v114_v0 = vshll.u32 %v110_v55, 16  ;;  %v92_v3 = vshll.u32 %v88_v57, 16 }
  0x93   :  { %v113_v16 = vshrl.u32 %v109_v54, 16  ;;  %v91_v21 = vshrl.u32 %v87_v56, 16  ;;  %v115_v23 = vshrl.u32 %v110_v55, 16  ;;  %v93_v26 = vshrl.u32 %v88_v57, 16 }
  0x94   :  { %vm116_vm5 = vc.u32 %v108_v58, %v112_v59  ;;  %v118_v2 = vadd.s32 %v112_v59, %v108_v58  ;;  %vm94_vm6 = vc.u32 %v86_v60, %v90_v61  ;;  %v96_v4 = vadd.s32 %v90_v61, %v86_v60 }
  0x95   :  { %v117_v5 = vsel %vm116_vm5, 1, %v449_v1  ;;  %v95_v8 = vsel %vm94_vm6, 1, %v449_v1  ;;  %v126_v30 = vmul.u32 %v508_v37, %v72_v25 }
  0x96   :  { %v119_v9 = vadd.s32 %v117_v5, %v111_v62  ;;  %vm120_vm7 = vc.u32 %v118_v2, %v114_v0  ;;  %v97_v12 = vadd.s32 %v95_v8, %v89_v63  ;;  %vm98_vm8 = vc.u32 %v96_v4, %v92_v3 }
  0x97   :  { %v121_v13 = vsel %vm120_vm7, 1, %v449_v1  ;;  %v99_v14 = vsel %vm98_vm8, 1, %v449_v1  ;;  %v122_v1 = vadd.s32 %v118_v2, %v114_v0  ;;  %v31_v5 = vlaneseq }
  0x98   :  { %v123_v18 = vadd.s32 %v121_v13, %v119_v9  ;;  %v101_v22 = vadd.s32 %v99_v14, %v97_v12 }
  0x99   :  { %v32_v13 = vand.u32 127, %v31_v5 }
  0x9a   :  { %v124_v24 = vadd.s32 %v123_v18, %v113_v16  ;;  %v102_v15 = vadd.s32 %v101_v22, %v91_v21 }
  0x9b   :  { %v343_v20 = vand.u32 1, %v32_v13 }
  0x9c   :  { %v125_v27 = vadd.s32 %v124_v24, %v115_v23  ;;  %v103_v28 = vadd.s32 %v102_v15, %v93_v26 }
  0x9d   :  { %vm344_vm5 = vcmp.eq.s32.totalorder %v343_v20, 0 }
  0x9e   :  { %v129_v29 = vadd.s32 1, %v125_v27  ;;  %vm128_vm9 = vc.u32 %v103_v28, %v122_v1  ;;  %v127_v42 = vadd.s32 %v122_v1, %v103_v28 }
  0xa0   :  { %v130_v31 = vsel %vm128_vm9, %v129_v29, %v125_v27 }
  0xa1   :  { %v131_v32 = vadd.s32 %v130_v31, %v126_v30 }
  0xa3   :  { %v132_v33 = vadd.s32 536870912, %v131_v32 }
  0xa5   :  { %v133_v34 = vshrl.u32 %v132_v33, 30 }
  0xa7   :  { %v134_v35 = vshll.u32 %v133_v34, 30  ;;  %v157_v55 = vsub.s32 4, %v133_v34 }
  0xa9   :  { %v135_v36 = vsub.s32 %v131_v32, %v134_v35  ;;  %v158_v60 = vsel %vm35_vm12, %v157_v55, %v133_v34 }
  0xaa   :  { %v160_v63 = vsel %vm34_vm13, 0, %v158_v60 }
  0xab   :  { %vm136_vm10 = vcmp.lt.s32.totalorder %v135_v36, 0  ;;  %v137_v38 = vsub.s32 0, %v135_v36  ;;  %v177_v7 = vadd.s32 3, %v160_v63  ;;  %v332_v12 = vand.u32 3, %v160_v63 }
  0xad   :  { %v138_v39 = vsel %vm136_vm10, %v137_v38, %v135_v36  ;;  %v178_v14 = vand.u32 3, %v177_v7  ;;  %vm333_vm14 = vcmp.lt.s32.totalorder %v332_v12, 2  ;;  %vm334_vm15 = vcmp.eq.s32.totalorder %v332_v12, 0 }
  0xae   :  { %v139_v40 = vclz %v138_v39  ;;  %vm337_vm3 = vcmp.eq.s32.totalorder %v332_v12, 2 }
  0xaf   :  { %vm179_vm0 = vcmp.lt.s32.totalorder %v178_v14, 2  ;;  %vm180_vm1 = vcmp.eq.s32.totalorder %v178_v14, 0  ;;  %vm183_vm2 = vcmp.eq.s32.totalorder %v178_v14, 2 }
  0xb0   :  { %v381_v41 = vadd.s32 4294967294, %v139_v40 }
  0xb2   :  { %vm382_vm11 = vcmp.lt.s32.totalorder %v381_v41, 0 }
  0xb3   :  { %v142_v17 = vsel %vm382_vm11, 0, %v381_v41 }
  0xb4   :  { %v143_v43 = vsub.s32 32, %v142_v17  ;;  %v147_v44 = vsub.s32 4294967266, %v142_v17  ;;  %v144_v45 = vshll.u32 %v135_v36, %v142_v17 }
  0xb6   :  { %v145_v46 = vshrl.u32 %v127_v42, %v143_v43  ;;  %v148_v37 = vadd.s32 127, %v147_v44 }
  0xb8   :  { %v146_v47 = vor.u32 %v145_v46, %v144_v45  ;;  %v149_v48 = vshll.u32 %v148_v37, 23 }
  0xba   :  { %v150_v49 = vor.u32 4788187, %v149_v48  ;;  %v153_v51 = vcvt.s32.f32 %v146_v47 }
  0xbc   :  { %v151_v50 = vand.u32 2147483647, %v150_v49 }
  0xbe   :  { %v154_v52 = vmul.f32 %v153_v51, %v151_v50 }
  0xc0   :  { %v155_v53 = vxor.u32 2147483648, %v154_v52 }
  0xc2   :  { %v156_v54 = vsel %vm35_vm12, %v155_v53, %v154_v52 }
  0xc3   :  { %v159_v56 = vsel %vm34_vm13, %v493_v6, %v156_v54 }
  0xc4   :  { %v161_v57 = vmul.f32 %v159_v56, %v159_v56 }
  0xc6   :  { %v162_v58 = vmul.f32 -0.001358992, %v161_v57  ;;  %v169_v59 = vmul.f32 -0.00019511016, %v161_v57 }
  0xc8   :  { %v163_v61 = vadd.f32 0.041655596, %v162_v58  ;;  %v170_v62 = vadd.f32 0.008332121, %v169_v59 }
  0xca   :  { %v164_v0 = vmul.f32 %v163_v61, %v161_v57  ;;  %v171_v2 = vmul.f32 %v170_v62, %v161_v57 }
  0xcc   :  { %v165_v3 = vadd.f32 -0.4999988, %v164_v0  ;;  %v172_v4 = vadd.f32 -0.16666654, %v171_v2 }
  0xce   :  { %v166_v8 = vmul.f32 %v165_v3, %v161_v57  ;;  %v173_v9 = vmul.f32 %v172_v4, %v161_v57 }
  0xd0   :  { %v167_v10 = vadd.f32 1.0, %v166_v8  ;;  %v174_v11 = vadd.f32 1.0, %v173_v9 }
  0xd2   :  { %v175_v16 = vmul.f32 %v174_v11, %v159_v56  ;;  %v184_v18 = vxor.u32 2147483648, %v167_v10 }
  0xd4   :  { %v181_v19 = vxor.u32 2147483648, %v175_v16  ;;  %v185_v22 = vsel %vm183_vm2, %v184_v18, %v175_v16  ;;  %v339_v24 = vsel %vm337_vm3, %v184_v18, %v175_v16 }
  0xd6   :  { %v182_v21 = vsel %vm180_vm1, %v167_v10, %v181_v19  ;;  %v336_v23 = vsel %vm334_vm15, %v167_v10, %v181_v19 }
  0xd7   :  { %v186_v26 = vsel %vm179_vm0, %v182_v21, %v185_v22  ;;  %v340_v15 = vsel %vm333_vm14, %v336_v23, %v339_v24 }
  0xd8   :  { %v187_v25 = vsel %vm176_vm4, nan, %v186_v26  ;;  %v341_v27 = vsel %vm176_vm4, nan, %v340_v15 }
  0xd9   :  { %342 = vst [vmem:[#allocation2] sm:$0xff] %v341_v27  ;;  %v345_v28 = vsub.f32 0.0, %v187_v25 }
  0xda   :  { %358 = dma.vmem_to_hbm [thread:$0]  %s354_s1, 128, %s356_s22, [#allocation3]  }
  0xdb   :  { %v346_v1 = vsel %vm344_vm5, %v345_v28, %v187_v25 }
  0xdc   :  { %347 = vst [vmem:[#allocation4] sm:$0xff] %v346_v1 }
  0xdd   :  { %369 = dma.vmem_to_hbm [thread:$0]  %s365_s24, 128, %s367_s27, [#allocation5]  }
  0xde   :  { %445 = dma.done.wait [#allocation3], 128  }
  0xdf   :  { %446 = vsyncadd [#allocation3], 4294967168 }
  0xe0   :  { %447 = dma.done.wait [#allocation5], 128  }
  0xe1   :  { %448 = vsyncadd [#allocation5], 4294967168 }
  0xe2   :  { %378 = vsyncpa [#allocation3], 1 }
  0xe3   :  { %379 = vsyncpa [#allocation5], 1 }

</bundles_post_ra>
